<compile_context>
chip_gen: v6e
topology: v6e:2x2x1
jax: 0.10.0
libtpu: 0.0.40
codegen_flags: <defaults>
</compile_context>

<pallas_src>
import jax
import jax.numpy as jnp
from jax import lax
from jax.experimental import pallas as pl
from jax.experimental.pallas import tpu as pltpu


_V_CHUNK = 512            # vocab rows materialized as one-hot per matmul
_UNROLL_CHUNKS = 8        # <= this many chunks: python-unroll; else pl.loop
_GATHER_WINDOW = 8        # outstanding row DMAs in the gather path
_GATHER_VOCAB_MIN = 1024  # beyond this, prefer the DMA row-gather path


def _round_up(x, m):
    return ((x + m - 1) // m) * m


def _vmem_capacity_bytes():
    """Per-core VMEM capacity (with a conservative fallback)."""
    try:
        cap = getattr(pltpu.get_tpu_info(), "vmem_capacity_bytes", None)
        if cap:
            return int(cap)
    except Exception:
        pass
    return 64 * 1024 * 1024  # v7x per-core VMEM; safe everywhere


# ---------------------------------------------------------------------------
# Path 1: table-resident one-hot matmul (small vocabularies).
# ---------------------------------------------------------------------------
def _make_onehot_kernel(chunk, nc, pack, d):
    """One-hot-select embedding rows via the MXU.

    idx_ref : (G, PACK)     int32   packed token indices for this tile
    w_ref   : (Vp, D)       table   zero-padded, VMEM-resident (single-buffered)
    out_ref : (G, PACK*D)   out     lane-dense packed embeddings (VMEM block,
                                    doubles as the accumulator: no carried
                                    jnp accumulators, no concatenates)
    """
    unroll = nc <= _UNROLL_CHUNKS

    def kernel(idx_ref, w_ref, out_ref):
        g = idx_ref.shape[0]
        idx = idx_ref[...]                                     # (G, PACK)

        def do_chunk(vc, is_first):
            w_chunk = w_ref[pl.ds(vc, chunk), :]               # (chunk, D)
            row_ids = vc + lax.broadcasted_iota(jnp.int32, (g, chunk), 1)
            for p in range(pack):
                onehot = (row_ids == idx[:, p:p + 1]).astype(w_chunk.dtype)
                contrib = jnp.dot(
                    onehot, w_chunk,
                    preferred_element_type=jnp.float32).astype(out_ref.dtype)
                sl = slice(p * d, (p + 1) * d)
                if is_first:
                    out_ref[:, sl] = contrib
                else:
                    # Only one chunk ever fires per token, so accumulation in
                    # the output dtype is exact (everything else adds zero).
                    out_ref[:, sl] = out_ref[:, sl] + contrib

        if unroll:
            for c in range(nc):
                do_chunk(c * chunk, c == 0)
        else:
            out_ref[...] = jnp.zeros_like(out_ref)

            @pl.loop(0, nc)
            def _(c):
                do_chunk(pl.multiple_of(c * chunk, chunk), False)

    return kernel


def _forward_onehot(idx_flat, w, n_tokens, out_dtype, token_tile, vmem_cap,
                    interpret):
    V, D = w.shape

    # Tokens packed per 128-lane output row (lane-dense, unmasked stores).
    if D < 128 and 128 % D == 0:
        pack = 128 // D
    else:
        pack = 1  # D >= 128 (or non-divisor of 128): output minor dim = D.

    tt = min(_round_up(token_tile, 8 * pack), _round_up(n_tokens, 8 * pack))
    n_pad = _round_up(n_tokens, tt)
    grid = n_pad // tt
    g_tile = tt // pack
    out_cols = pack * D

    if n_pad != n_tokens:
        idx_flat = jnp.pad(idx_flat, (0, n_pad - n_tokens))
    idx2d = idx_flat.reshape(n_pad // pack, pack)

    # Zero-pad the vocab (contraction dim) to a whole number of chunks; padded
    # rows are never selected by (clamped) indices.
    chunk = min(_V_CHUNK, _round_up(V, 128))
    v_pad = _round_up(V, chunk)
    nc = v_pad // chunk
    if v_pad != V:
        w = jnp.pad(w, ((0, v_pad - V), (0, 0)))

    itemsize = jnp.dtype(w.dtype).itemsize
    lane = lambda c: _round_up(c, 128)
    sub = lambda r: _round_up(r, 8)
    # Single-buffered, lane-padded resident table + double-buffered streams.
    table_bytes = sub(v_pad) * lane(D) * itemsize
    stream_bytes = 2 * sub(g_tile) * (lane(pack) * 4 + lane(out_cols) * 4)
    vmem_limit = int(min(int(vmem_cap * 0.85),
                         max(table_bytes + stream_bytes + (8 << 20), 32 << 20)))

    cost = pl.CostEstimate(
        flops=2 * n_pad * v_pad * D,
        transcendentals=0,
        bytes_accessed=4 * n_pad + v_pad * D * itemsize + n_pad * D * 4)

    kernel = _make_onehot_kernel(chunk, nc, pack, D)
    out_shape = jax.ShapeDtypeStruct((n_pad // pack, out_cols), out_dtype)

    def run(single_buffer_table):
        if single_buffer_table:
            # Constant index_map -> the table is fetched once and stays
            # resident; Buffered(1) avoids allocating a useless second buffer.
            table_spec = pl.BlockSpec((v_pad, D), lambda i: (0, 0),
                                      pipeline_mode=pl.Buffered(1))
        else:
            table_spec = pl.BlockSpec((v_pad, D), lambda i: (0, 0))
        return pl.pallas_call(
            kernel,
            out_shape=out_shape,
            grid_spec=pltpu.PrefetchScalarGridSpec(
                num_scalar_prefetch=0,
                grid=(grid,),
                in_specs=[
                    pl.BlockSpec((g_tile, pack), lambda i: (i, 0)),  # indices
                    table_spec,                                      # table
                ],
                out_specs=pl.BlockSpec((g_tile, out_cols), lambda i: (i, 0)),
            ),
            compiler_params=pltpu.CompilerParams(
                # Token axis is parallel (megacore): note each core keeps its
                # OWN resident table copy in its private VMEM.
                dimension_semantics=("parallel",),
                vmem_limit_bytes=vmem_limit,
            ),
            cost_estimate=cost,
            interpret=interpret,
        )(idx2d, w)

    try:
        out = run(True)
    except Exception:
        out = run(False)  # fall back to the default double-buffered table

    out = out.reshape(n_pad, D)
    if n_pad != n_tokens:
        out = out[:n_tokens]
    return out


# ---------------------------------------------------------------------------
# Path 2: scalar-prefetch DMA row-gather (large vocabularies).
# ---------------------------------------------------------------------------
def _gather_kernel(idx_ref, w_hbm, out_ref, sems):
    """Gather table rows straight from HBM into the output VMEM block.

    idx_ref : SMEM (n_pad,)  int32   flattened indices (scalar-prefetch)
    w_hbm   : ANY  (V, D)            embedding table, stays in HBM
    out_ref : VMEM (tt, D)           output block for this grid step
    sems    : DMA semaphores, shape (_GATHER_WINDOW,)
    """
    tt = out_ref.shape[0]
    base = pl.program_id(0) * tt

    def row_copy(t):
        row = idx_ref[base + t]
        return pltpu.make_async_copy(
            w_hbm.at[pl.ds(row, 1), :],
            out_ref.at[pl.ds(t, 1), :],
            sems.at[t % _GATHER_WINDOW])

    def issue(t, carry):
        @pl.when(t >= _GATHER_WINDOW)
        def _():
            # Retire the copy that previously used this semaphore slot.
            row_copy(jnp.maximum(t - _GATHER_WINDOW, 0)).wait()
        row_copy(t).start()
        return carry

    lax.fori_loop(0, tt, issue, 0)

    def drain(t, carry):
        row_copy(t).wait()
        return carry

    lax.fori_loop(max(tt - _GATHER_WINDOW, 0), tt, drain, 0)


def _forward_gather(idx_flat, w, n_tokens, token_tile, interpret):
    V, D = w.shape
    tt = min(_round_up(token_tile, 8), _round_up(n_tokens, 8))
    n_pad = _round_up(n_tokens, tt)
    grid = n_pad // tt
    if n_pad != n_tokens:
        idx_flat = jnp.pad(idx_flat, (0, n_pad - n_tokens))

    itemsize = jnp.dtype(w.dtype).itemsize
    cost = pl.CostEstimate(
        flops=0,
        transcendentals=0,
        bytes_accessed=4 * n_pad + 2 * n_pad * D * itemsize)

    # TODO(synk): for very large N, tile the index stream instead of keeping
    # the whole flattened index vector resident in SMEM.
    out = pl.pallas_call(
        _gather_kernel,
        out_shape=jax.ShapeDtypeStruct((n_pad, D), w.dtype),
        grid_spec=pltpu.PrefetchScalarGridSpec(
            num_scalar_prefetch=1,
            grid=(grid,),
            in_specs=[pl.BlockSpec(memory_space=pl.ANY)],   # table stays in HBM
            out_specs=pl.BlockSpec((tt, D), lambda i, idx: (i, 0)),
            scratch_shapes=[pltpu.SemaphoreType.DMA((_GATHER_WINDOW,))],
        ),
        compiler_params=pltpu.CompilerParams(
            dimension_semantics=("arbitrary",)),
        cost_estimate=cost,
        interpret=interpret,
    )(idx_flat, w)

    if n_pad != n_tokens:
        out = out[:n_tokens]
    return out


# ---------------------------------------------------------------------------
# Public forward.
# ---------------------------------------------------------------------------
def fg_encoder_forward(fg, emb_weight, *, token_tile=2048, use_gather=None,
                       table_dtype=None, interpret=False):
    """fg: integer indices of any shape; emb_weight: (V, D) -> fg.shape + (D,)."""
    orig_shape = fg.shape
    V, D = emb_weight.shape
    N = fg.size
    out_dtype = emb_weight.dtype

    w = emb_weight if table_dtype is None else emb_weight.astype(table_dtype)
    itemsize = jnp.dtype(w.dtype).itemsize

    # Clamp indices: torch.nn.Embedding errors on OOB; clamping guarantees the
    # DMA gather path never issues an out-of-bounds HBM read.
    idx_flat = jnp.clip(fg.reshape(-1).astype(jnp.int32), 0, V - 1)

    vmem_cap = _vmem_capacity_bytes()
    table_resident_bytes = _round_up(V, 128) * _round_up(D, 128) * itemsize
    if use_gather is None:
        use_gather = (V > _GATHER_VOCAB_MIN) or (
            table_resident_bytes > vmem_cap // 3)

    if use_gather:
        out = _forward_gather(idx_flat, w, N, token_tile, interpret)
    else:
        out = _forward_onehot(idx_flat, w, N, out_dtype, token_tile, vmem_cap,
                              interpret)

    if out.dtype != out_dtype:
        out = out.astype(out_dtype)
    return out.reshape(orig_shape + (D,))


def init_fg_encoder_params(key, vocab_size, emb_dim):
    # torch.nn.init.xavier_uniform_: U(-a, a), a = sqrt(6 / (fan_in + fan_out))
    a = (6.0 / (vocab_size + emb_dim)) ** 0.5
    return jax.random.uniform(key, (vocab_size, emb_dim),
                              dtype=jnp.float32, minval=-a, maxval=a)


if __name__ == "__main__":
    root = jax.random.PRNGKey(0)
    k = jax.random.split(root, 10)

    # --- main config (small demo, matches the module's intent) ---
    vocab_size, emb_dim = 64, 32
    B, S = 2, 8
    w1 = init_fg_encoder_params(k[0], vocab_size, emb_dim)
    fg1 = jax.random.randint(k[1], (B, S), 0, vocab_size, dtype=jnp.int32)
    out1 = jax.block_until_ready(fg_encoder_forward(fg1, w1))
    ref1 = jnp.take(w1, fg1.reshape(-1), axis=0).reshape(B, S, emb_dim)
    assert out1.shape == (B, S, emb_dim)
    assert jnp.allclose(out1, ref1, atol=1e-6), "mismatch (main config)"

    # --- ragged token count + non-128 vocab + multi-step grid (tail padding) ---
    w2 = init_fg_encoder_params(k[2], 100, 32)
    fg2 = jax.random.randint(k[3], (3, 50), 0, 100, dtype=jnp.int32)
    out2 = jax.block_until_ready(fg_encoder_forward(fg2, w2, token_tile=64))
    ref2 = jnp.take(w2, fg2.reshape(-1), axis=0).reshape(3, 50, 32)
    assert jnp.allclose(out2, ref2, atol=1e-6), "mismatch (ragged config)"

    # --- emb_dim already lane-dense (pack == 1 path) ---
    w3 = init_fg_encoder_params(k[4], 40, 128)
    fg3 = jax.random.randint(k[5], (5, 7), 0, 40, dtype=jnp.int32)
    out3 = jax.block_until_ready(fg_encoder_forward(fg3, w3))
    ref3 = jnp.take(w3, fg3.reshape(-1), axis=0).reshape(5, 7, 128)
    assert jnp.allclose(out3, ref3, atol=1e-6), "mismatch (wide-D config)"

    # --- bf16 table on the MXU (flag-gated; exact vs bf16-cast reference) ---
    out1b = jax.block_until_ready(
        fg_encoder_forward(fg1, w1, table_dtype=jnp.bfloat16))
    ref1b = jnp.take(w1.astype(jnp.bfloat16).astype(jnp.float32),
                     fg1.reshape(-1), axis=0).reshape(B, S, emb_dim)
    assert jnp.allclose(out1b, ref1b, atol=1e-6), "mismatch (bf16 table)"

    # --- large vocab -> auto-selected DMA row-gather path (multi-step grid) ---
    w4 = init_fg_encoder_params(k[6], 2048, 64)
    fg4 = jax.random.randint(k[7], (4, 96), 0, 2048, dtype=jnp.int32)
    out4 = jax.block_until_ready(fg_encoder_forward(fg4, w4, token_tile=128))
    ref4 = jnp.take(w4, fg4.reshape(-1), axis=0).reshape(4, 96, 64)
    assert jnp.allclose(out4, ref4, atol=1e-6), "mismatch (gather path)"

    # --- many vocab chunks on the one-hot path (pl.loop accumulation) ---
    w5 = init_fg_encoder_params(k[8], 5000, 32)
    fg5 = jax.random.randint(k[9], (2, 20), 0, 5000, dtype=jnp.int32)
    out5 = jax.block_until_ready(fg_encoder_forward(fg5, w5, use_gather=False))
    ref5 = jnp.take(w5, fg5.reshape(-1), axis=0).reshape(2, 20, 32)
    assert jnp.allclose(out5, ref5, atol=1e-6), "mismatch (chunk-loop config)"

    print("KERNEL_OK")
</pallas_src>

<mosaic_0001>
module attributes {stable_mosaic.version = 11 : i64} {
  func.func @kernel(%arg0: i32, %arg1: memref<8x4xi32, #tpu.memory_space<vmem>>, %arg2: memref<128x32xf32, #tpu.memory_space<vmem>>, %arg3: memref<8x128xf32, #tpu.memory_space<vmem>>) attributes {dimension_semantics = [#tpu.dimension_semantics<parallel>], iteration_bounds = array<i64: 1>, scalar_prefetch = 0 : i64, scratch_operands = 0 : i64, tpu.core_type = #tpu.core_type<tc>, window_params = [{transform_indices = @transform_0, window_bounds = array<i64: 8, 4>}, {pipeline_mode = #tpu.pipeline_mode<synchronous>, transform_indices = @transform_1, window_bounds = array<i64: 128, 32>}, {transform_indices = @transform_2, window_bounds = array<i64: 8, 128>}]} {
    %c0 = arith.constant 0 : index
    %c0_0 = arith.constant 0 : index
    %0 = vector.load %arg1[%c0, %c0_0] : memref<8x4xi32, #tpu.memory_space<vmem>>, vector<8x4xi32>
    %c0_1 = arith.constant 0 : index
    %c0_2 = arith.constant 0 : index
    %1 = vector.load %arg2[%c0_1, %c0_2] : memref<128x32xf32, #tpu.memory_space<vmem>>, vector<128x32xf32>
    %2 = tpu.iota {dimensions = array<i32: 1>} : vector<8x128xi32>
    %c0_i32 = arith.constant 0 : i32
    %3 = vector.broadcast %c0_i32 : i32 to vector<8x128xi32>
    %4 = arith.addi %3, %2 : vector<8x128xi32>
    %5 = vector.extract_strided_slice %0 {offsets = [0, 0], sizes = [8, 1], strides = [1, 1]} : vector<8x4xi32> to vector<8x1xi32>
    %6 = vector.broadcast %5 : vector<8x1xi32> to vector<8x128xi32>
    %7 = arith.cmpi eq, %4, %6 : vector<8x128xi32>
    %8 = arith.extui %7 : vector<8x128xi1> to vector<8x128xi32>
    %9 = arith.sitofp %8 : vector<8x128xi32> to vector<8x128xf32>
    %cst = arith.constant dense<0.000000e+00> : vector<8x32xf32>
    %10 = tpu.matmul %9, %1, %cst {dimension_numbers = #tpu.dot_dimension_numbers<[1], [0], [0], [1], [0, 0, 1, 1], [], []>} : vector<8x128xf32>, vector<128x32xf32>, vector<8x32xf32> -> vector<8x32xf32>
    %c0_3 = arith.constant 0 : index
    %c0_4 = arith.constant 0 : index
    %11 = vector.load %arg3[%c0_3, %c0_4] : memref<8x128xf32, #tpu.memory_space<vmem>>, vector<8x32xf32>
    tpu.vector_store %arg3[%c0_3, %c0_4], %10 {strides = array<i32>} : memref<8x128xf32, #tpu.memory_space<vmem>>, vector<8x32xf32>,
    %12 = vector.extract_strided_slice %0 {offsets = [0, 1], sizes = [8, 1], strides = [1, 1]} : vector<8x4xi32> to vector<8x1xi32>
    %13 = vector.broadcast %12 : vector<8x1xi32> to vector<8x128xi32>
    %14 = arith.cmpi eq, %4, %13 : vector<8x128xi32>
    %15 = arith.extui %14 : vector<8x128xi1> to vector<8x128xi32>
    %16 = arith.sitofp %15 : vector<8x128xi32> to vector<8x128xf32>
    %cst_5 = arith.constant dense<0.000000e+00> : vector<8x32xf32>
    %17 = tpu.matmul %16, %1, %cst_5 {dimension_numbers = #tpu.dot_dimension_numbers<[1], [0], [0], [1], [0, 0, 1, 1], [], []>} : vector<8x128xf32>, vector<128x32xf32>, vector<8x32xf32> -> vector<8x32xf32>
    %c0_6 = arith.constant 0 : index
    %c32 = arith.constant 32 : index
    %18 = vector.load %arg3[%c0_6, %c32] : memref<8x128xf32, #tpu.memory_space<vmem>>, vector<8x32xf32>
    tpu.vector_store %arg3[%c0_6, %c32], %17 {strides = array<i32>} : memref<8x128xf32, #tpu.memory_space<vmem>>, vector<8x32xf32>,
    %19 = vector.extract_strided_slice %0 {offsets = [0, 2], sizes = [8, 1], strides = [1, 1]} : vector<8x4xi32> to vector<8x1xi32>
    %20 = vector.broadcast %19 : vector<8x1xi32> to vector<8x128xi32>
    %21 = arith.cmpi eq, %4, %20 : vector<8x128xi32>
    %22 = arith.extui %21 : vector<8x128xi1> to vector<8x128xi32>
    %23 = arith.sitofp %22 : vector<8x128xi32> to vector<8x128xf32>
    %cst_7 = arith.constant dense<0.000000e+00> : vector<8x32xf32>
    %24 = tpu.matmul %23, %1, %cst_7 {dimension_numbers = #tpu.dot_dimension_numbers<[1], [0], [0], [1], [0, 0, 1, 1], [], []>} : vector<8x128xf32>, vector<128x32xf32>, vector<8x32xf32> -> vector<8x32xf32>
    %c0_8 = arith.constant 0 : index
    %c64 = arith.constant 64 : index
    %25 = vector.load %arg3[%c0_8, %c64] : memref<8x128xf32, #tpu.memory_space<vmem>>, vector<8x32xf32>
    tpu.vector_store %arg3[%c0_8, %c64], %24 {strides = array<i32>} : memref<8x128xf32, #tpu.memory_space<vmem>>, vector<8x32xf32>,
    %26 = vector.extract_strided_slice %0 {offsets = [0, 3], sizes = [8, 1], strides = [1, 1]} : vector<8x4xi32> to vector<8x1xi32>
    %27 = vector.broadcast %26 : vector<8x1xi32> to vector<8x128xi32>
    %28 = arith.cmpi eq, %4, %27 : vector<8x128xi32>
    %29 = arith.extui %28 : vector<8x128xi1> to vector<8x128xi32>
    %30 = arith.sitofp %29 : vector<8x128xi32> to vector<8x128xf32>
    %cst_9 = arith.constant dense<0.000000e+00> : vector<8x32xf32>
    %31 = tpu.matmul %30, %1, %cst_9 {dimension_numbers = #tpu.dot_dimension_numbers<[1], [0], [0], [1], [0, 0, 1, 1], [], []>} : vector<8x128xf32>, vector<128x32xf32>, vector<8x32xf32> -> vector<8x32xf32>
    %c0_10 = arith.constant 0 : index
    %c96 = arith.constant 96 : index
    %32 = vector.load %arg3[%c0_10, %c96] : memref<8x128xf32, #tpu.memory_space<vmem>>, vector<8x32xf32>
    tpu.vector_store %arg3[%c0_10, %c96], %31 {strides = array<i32>} : memref<8x128xf32, #tpu.memory_space<vmem>>, vector<8x32xf32>,
    return
  }
  func.func @transform_0(%arg0: i32) -> (i32, i32) {
    %c0_i32 = arith.constant 0 : i32
    %c0_i32_0 = arith.constant 0 : i32
    return %arg0, %c0_i32 : i32, i32
  }
  func.func @transform_1(%arg0: i32) -> (i32, i32) {
    %c0_i32 = arith.constant 0 : i32
    %c0_i32_0 = arith.constant 0 : i32
    %c0_i32_1 = arith.constant 0 : i32
    return %c0_i32, %c0_i32_0 : i32, i32
  }
  func.func @transform_2(%arg0: i32) -> (i32, i32) {
    %c0_i32 = arith.constant 0 : i32
    %c0_i32_0 = arith.constant 0 : i32
    return %arg0, %c0_i32 : i32, i32
  }
}

module attributes {stable_mosaic.version = 11 : i64} {
  func.func @kernel(%arg0: i32, %arg1: memref<8x4xi32, #tpu.memory_space<vmem>>, %arg2: memref<128x32xf32, #tpu.memory_space<vmem>>, %arg3: memref<8x128xf32, #tpu.memory_space<vmem>>) attributes {dimension_semantics = [#tpu.dimension_semantics<parallel>], iteration_bounds = array<i64: 1>, scalar_prefetch = 0 : i64, scratch_operands = 0 : i64, tpu.core_type = #tpu.core_type<tc>, window_params = [{transform_indices = @transform_0, window_bounds = array<i64: 8, 4>}, {pipeline_mode = #tpu.pipeline_mode<synchronous>, transform_indices = @transform_1, window_bounds = array<i64: 128, 32>}, {transform_indices = @transform_2, window_bounds = array<i64: 8, 128>}]} {
    %c0 = arith.constant 0 : index
    %c0_0 = arith.constant 0 : index
    %0 = vector.load %arg1[%c0, %c0_0] : memref<8x4xi32, #tpu.memory_space<vmem>>, vector<8x4xi32>
    %c0_1 = arith.constant 0 : index
    %c0_2 = arith.constant 0 : index
    %1 = vector.load %arg2[%c0_1, %c0_2] : memref<128x32xf32, #tpu.memory_space<vmem>>, vector<128x32xf32>
    %2 = tpu.iota {dimensions = array<i32: 1>} : vector<8x128xi32>
    %c0_i32 = arith.constant 0 : i32
    %3 = vector.broadcast %c0_i32 : i32 to vector<8x128xi32>
    %4 = arith.addi %3, %2 : vector<8x128xi32>
    %5 = vector.extract_strided_slice %0 {offsets = [0, 0], sizes = [8, 1], strides = [1, 1]} : vector<8x4xi32> to vector<8x1xi32>
    %6 = vector.broadcast %5 : vector<8x1xi32> to vector<8x128xi32>
    %7 = arith.cmpi eq, %4, %6 : vector<8x128xi32>
    %8 = arith.extui %7 : vector<8x128xi1> to vector<8x128xi32>
    %9 = arith.sitofp %8 : vector<8x128xi32> to vector<8x128xf32>
    %cst = arith.constant dense<0.000000e+00> : vector<8x32xf32>
    %10 = tpu.matmul %9, %1, %cst {dimension_numbers = #tpu.dot_dimension_numbers<[1], [0], [0], [1], [0, 0, 1, 1], [], []>} : vector<8x128xf32>, vector<128x32xf32>, vector<8x32xf32> -> vector<8x32xf32>
    %c0_3 = arith.constant 0 : index
    %c0_4 = arith.constant 0 : index
    %11 = vector.load %arg3[%c0_3, %c0_4] : memref<8x128xf32, #tpu.memory_space<vmem>>, vector<8x32xf32>
    tpu.vector_store %arg3[%c0_3, %c0_4], %10 {strides = array<i32>} : memref<8x128xf32, #tpu.memory_space<vmem>>, vector<8x32xf32>,
    %12 = vector.extract_strided_slice %0 {offsets = [0, 1], sizes = [8, 1], strides = [1, 1]} : vector<8x4xi32> to vector<8x1xi32>
    %13 = vector.broadcast %12 : vector<8x1xi32> to vector<8x128xi32>
    %14 = arith.cmpi eq, %4, %13 : vector<8x128xi32>
    %15 = arith.extui %14 : vector<8x128xi1> to vector<8x128xi32>
    %16 = arith.sitofp %15 : vector<8x128xi32> to vector<8x128xf32>
    %cst_5 = arith.constant dense<0.000000e+00> : vector<8x32xf32>
    %17 = tpu.matmul %16, %1, %cst_5 {dimension_numbers = #tpu.dot_dimension_numbers<[1], [0], [0], [1], [0, 0, 1, 1], [], []>} : vector<8x128xf32>, vector<128x32xf32>, vector<8x32xf32> -> vector<8x32xf32>
    %c0_6 = arith.constant 0 : index
    %c32 = arith.constant 32 : index
    %18 = vector.load %arg3[%c0_6, %c32] : memref<8x128xf32, #tpu.memory_space<vmem>>, vector<8x32xf32>
    tpu.vector_store %arg3[%c0_6, %c32], %17 {strides = array<i32>} : memref<8x128xf32, #tpu.memory_space<vmem>>, vector<8x32xf32>,
    %19 = vector.extract_strided_slice %0 {offsets = [0, 2], sizes = [8, 1], strides = [1, 1]} : vector<8x4xi32> to vector<8x1xi32>
    %20 = vector.broadcast %19 : vector<8x1xi32> to vector<8x128xi32>
    %21 = arith.cmpi eq, %4, %20 : vector<8x128xi32>
    %22 = arith.extui %21 : vector<8x128xi1> to vector<8x128xi32>
    %23 = arith.sitofp %22 : vector<8x128xi32> to vector<8x128xf32>
    %cst_7 = arith.constant dense<0.000000e+00> : vector<8x32xf32>
    %24 = tpu.matmul %23, %1, %cst_7 {dimension_numbers = #tpu.dot_dimension_numbers<[1], [0], [0], [1], [0, 0, 1, 1], [], []>} : vector<8x128xf32>, vector<128x32xf32>, vector<8x32xf32> -> vector<8x32xf32>
    %c0_8 = arith.constant 0 : index
    %c64 = arith.constant 64 : index
    %25 = vector.load %arg3[%c0_8, %c64] : memref<8x128xf32, #tpu.memory_space<vmem>>, vector<8x32xf32>
    tpu.vector_store %arg3[%c0_8, %c64], %24 {strides = array<i32>} : memref<8x128xf32, #tpu.memory_space<vmem>>, vector<8x32xf32>,
    %26 = vector.extract_strided_slice %0 {offsets = [0, 3], sizes = [8, 1], strides = [1, 1]} : vector<8x4xi32> to vector<8x1xi32>
    %27 = vector.broadcast %26 : vector<8x1xi32> to vector<8x128xi32>
    %28 = arith.cmpi eq, %4, %27 : vector<8x128xi32>
    %29 = arith.extui %28 : vector<8x128xi1> to vector<8x128xi32>
    %30 = arith.sitofp %29 : vector<8x128xi32> to vector<8x128xf32>
    %cst_9 = arith.constant dense<0.000000e+00> : vector<8x32xf32>
    %31 = tpu.matmul %30, %1, %cst_9 {dimension_numbers = #tpu.dot_dimension_numbers<[1], [0], [0], [1], [0, 0, 1, 1], [], []>} : vector<8x128xf32>, vector<128x32xf32>, vector<8x32xf32> -> vector<8x32xf32>
    %c0_10 = arith.constant 0 : index
    %c96 = arith.constant 96 : index
    %32 = vector.load %arg3[%c0_10, %c96] : memref<8x128xf32, #tpu.memory_space<vmem>>, vector<8x32xf32>
    tpu.vector_store %arg3[%c0_10, %c96], %31 {strides = array<i32>} : memref<8x128xf32, #tpu.memory_space<vmem>>, vector<8x32xf32>,
    return
  }
  func.func @transform_0(%arg0: i32) -> (i32, i32) {
    %c0_i32 = arith.constant 0 : i32
    %c0_i32_0 = arith.constant 0 : i32
    return %arg0, %c0_i32 : i32, i32
  }
  func.func @transform_1(%arg0: i32) -> (i32, i32) {
    %c0_i32 = arith.constant 0 : i32
    %c0_i32_0 = arith.constant 0 : i32
    %c0_i32_1 = arith.constant 0 : i32
    return %c0_i32, %c0_i32_0 : i32, i32
  }
  func.func @transform_2(%arg0: i32) -> (i32, i32) {
    %c0_i32 = arith.constant 0 : i32
    %c0_i32_0 = arith.constant 0 : i32
    return %arg0, %c0_i32 : i32, i32
  }
}

</mosaic_0001>

<bundles_post_ra>
// kernel: tpu_custom_call.1
= control target key start
LH: loop header
LB: loop body
LE: loop exit
PB: predicated region body
PF: predicated region fallthrough
CT: control target
= control target key end

     0   :  { %v623_v1 = vmov 0   ;;  %v624_v2 = vmov 2   ;;  %v625_v4 = vmov 0.0   ;;  %v626_v6 = vmov 1   ;;  %s883_s0 = inlined_call_operand.vmem [shape: s32[8,4], index: 0, kind: input, shape index: {}]   ;;  %s884_s1 = inlined_call_operand.vmem [shape: f32[128,32], index: 1, kind: input, shape index: {}]   ;;  %s885_s2 = inlined_call_operand.hbm [shape: f32[8,128], index: 2, kind: output, shape index: {}]  }
   0x1   :  { %v12_v0 = vld [vmem:[%s883_s0] sm:$0xff]  ;;  %596 = vset.pattern.permute.xlu0 %v623_v1  ;;  %598 = vset.pattern.permute.xlu1 %v624_v2  ;;  %v655_v3 = vld [vmem:[%s884_s1 + $0x78] sm:$0xff]  ;;  %v665_v5 = vld [vmem:[%s884_s1 + $0x70] sm:$0xff]  ;;  %v627_v7 = vmov 3  }
   0x2   :  { %32 = vperm.xlu0 %596, %v12_v0   ;;  %192 = vperm.xlu1 %598, %v12_v0  }
   0x3   :  { %445 = vmatprep.subr.mxu0 %v625_v4  ;;  %480 = vmatprep.subr.mxu1 %v625_v4 }
   0x4   :  { %446 = vmatpush3.msra.mxu0 %v655_v3  ;;  %481 = vmatpush3.msra.mxu1 %v655_v3 }
   0x5   :  { %447 = vmatprep.subr.mxu0 %v625_v4  ;;  %482 = vmatprep.subr.mxu1 %v625_v4 }
   0x6   :  { %597 = vset.pattern.permute.xlu0 %v626_v6  ;;  %599 = vset.pattern.permute.xlu1 %v627_v7 }
   0x7   :  { %7 = vsyncpa [#allocation3], 0  ;;  %110 = vperm.xlu0 %597, %v12_v0   ;;  %274 = vperm.xlu1 %599, %v12_v0   ;;  %v672_v8 = vld [vmem:[%s884_s1 + $0x68] sm:$0xff]  ;;  %v680_v9 = vld [vmem:[%s884_s1 + $0x60] sm:$0xff]  ;;  %vm628_vm0 = vmmov 0   ;;  %v29_v22 = vlaneseq  ;;  %v629_v25 = vmov 1.0  }
   0x8   :  { %448 = vmatpush3.msra.mxu0 %v665_v5  ;;  %483 = vmatpush3.msra.mxu1 %v665_v5  ;;  %v689_v10 = vld [vmem:[%s884_s1 + $0x58] sm:$0xff]  ;;  %v698_v11 = vld [vmem:[%s884_s1 + $0x50] sm:$0xff]  ;;  %v707_v12 = vld [vmem:[%s884_s1 + $0x48] sm:$0xff]  ;;  %vm107_vm5 = vcmask 261120   ;;  %s631_s13 = smov 64   ;;  %s632_s14 = smov 96  }
   0x9   :  { %449 = vmatprep.subr.mxu0 %v625_v4  ;;  %484 = vmatprep.subr.mxu1 %v625_v4  ;;  %v716_v13 = vld [vmem:[%s884_s1 + $0x40] sm:$0xff]  ;;  %v725_v14 = vld [vmem:[%s884_s1 + $0x38] sm:$0xff]  ;;  %v734_v15 = vld [vmem:[%s884_s1 + $0x30] sm:$0xff]  ;;  %v804_v23 = vand.u32 127, %v29_v22  ;;  %vm189_vm6 = vcmask 523520   ;;  %vm271_vm7 = vcmask 785920  }
   0xa   :  { %450 = vmatpush3.msra.mxu0 %v672_v8  ;;  %485 = vmatpush3.msra.mxu1 %v672_v8  ;;  %v743_v16 = vld [vmem:[%s884_s1 + $0x28] sm:$0xff]  ;;  %v752_v17 = vld [vmem:[%s884_s1 + $0x20] sm:$0xff]  ;;  %v761_v18 = vld [vmem:[%s884_s1 + $0x18] sm:$0xff]  ;;  %s633_s15 = smov [#allocation2]   ;;  %vm353_vm8 = vcmask 1048320  }
   0xb   :  { %451 = vmatprep.subr.mxu0 %v625_v4  ;;  %486 = vmatprep.subr.mxu1 %v625_v4  ;;  %v770_v19 = vld [vmem:[%s884_s1 + $0x10] sm:$0xff]  ;;  %v779_v20 = vld [vmem:[%s884_s1 + $0x8] sm:$0xff]  ;;  %v789_v21 = vld [vmem:[%s884_s1] sm:$0xff]  ;;  %s630_s1 = smov 32   ;;  %s361_s16 = sshll.u32 %s633_s15, 4  ;;  %s362_s16 = int_to_ptr.vmem [resolvable:$true] %s361_s16 }
   0xc   :  { %452 = vmatpush3.msra.mxu0 %v680_v9  ;;  %487 = vmatpush3.msra.mxu1 %v680_v9  ;;  %s601_s17 = scalar_lea.vmem %s362_s16, 128  ;;  %p606_p1 = scmp.lt.s32.totalorder %s362_s16, %s362_s16 }
   0xd   :  { %453 = vmatprep.subr.mxu0 %v625_v4  ;;  %488 = vmatprep.subr.mxu1 %v625_v4  ;;  %p602_p0 = scmp.ne.s32.totalorder %s362_s16, %s601_s17  ;;  %p607_p2 = scmp.lt.s32.totalorder %s601_s17, %s601_s17 }
   0xe   :  { %454 = vmatpush3.msra.mxu0 %v689_v10  ;;  %489 = vmatpush3.msra.mxu1 %v689_v10 }
   0xf   :  { %455 = vmatprep.subr.mxu0 %v625_v4  ;;  %490 = vmatprep.subr.mxu1 %v625_v4  ;;  %p608_p3 = por %p607_p2, %p606_p1 }
  0x10   :  { %456 = vmatpush3.msra.mxu0 %v698_v11  ;;  %491 = vmatpush3.msra.mxu1 %v698_v11 }
  0x11   :  { %457 = vmatprep.subr.mxu0 %v625_v4  ;;  %492 = vmatprep.subr.mxu1 %v625_v4  ;;  %p609_p4 = pnand %p608_p3, %p602_p0 }
  0x12   :  { %458 = vmatpush3.msra.mxu0 %v707_v12  ;;  %493 = vmatpush3.msra.mxu1 %v707_v12 }
  0x13   :  { %459 = vmatprep.subr.mxu0 %v625_v4  ;;  %494 = vmatprep.subr.mxu1 %v625_v4 }
  0x14   :  { %460 = vmatpush3.msra.mxu0 %v716_v13  ;;  %495 = vmatpush3.msra.mxu1 %v716_v13 }
  0x15   :  { %461 = vmatprep.subr.mxu0 %v625_v4  ;;  %496 = vmatprep.subr.mxu1 %v625_v4 }
  0x16   :  { %462 = vmatpush3.msra.mxu0 %v725_v14  ;;  %497 = vmatpush3.msra.mxu1 %v725_v14 }
  0x17   :  { %463 = vmatprep.subr.mxu0 %v625_v4  ;;  %498 = vmatprep.subr.mxu1 %v625_v4 }
  0x18   :  { %464 = vmatpush3.msra.mxu0 %v734_v15  ;;  %499 = vmatpush3.msra.mxu1 %v734_v15 }
  0x19   :  { %465 = vmatprep.subr.mxu0 %v625_v4  ;;  %500 = vmatprep.subr.mxu1 %v625_v4 }
  0x1a   :  { %466 = vmatpush3.msra.mxu0 %v743_v16  ;;  %501 = vmatpush3.msra.mxu1 %v743_v16 }
  0x1b   :  { %467 = vmatprep.subr.mxu0 %v625_v4  ;;  %502 = vmatprep.subr.mxu1 %v625_v4 }
  0x1c   :  { %468 = vmatpush3.msra.mxu0 %v752_v17  ;;  %503 = vmatpush3.msra.mxu1 %v752_v17 }
  0x1d   :  { %469 = vmatprep.subr.mxu0 %v625_v4  ;;  %504 = vmatprep.subr.mxu1 %v625_v4 }
  0x1e   :  { %470 = vmatpush3.msra.mxu0 %v761_v18  ;;  %505 = vmatpush3.msra.mxu1 %v761_v18 }
  0x1f   :  { %471 = vmatprep.subr.mxu0 %v625_v4  ;;  %506 = vmatprep.subr.mxu1 %v625_v4 }
  0x20   :  { %472 = vmatpush3.msra.mxu0 %v770_v19  ;;  %477 = vmatprep.mubr.msk.f32.mxu0 %vm628_vm0, %v625_v4 }
  0x21   :  { %473 = vmatprep.subr.mxu0 %v625_v4  ;;  %507 = vmatpush3.msra.mxu1 %v770_v19 }
  0x22   :  { %474 = vmatpush3.msra.mxu0 %v779_v20  ;;  %508 = vmatprep.subr.mxu1 %v625_v4 }
  0x23   :  { %475 = vmatprep.subr.mxu0 %v625_v4  ;;  %509 = vmatpush3.msra.mxu1 %v779_v20 }
  0x24   :  { %476 = vmatpush3.msra.mxu0 %v789_v21  ;;  %510 = vmatprep.subr.mxu1 %v625_v4 }
  0x25   :  { %515 = vmatprep.subr.mxu0 %v625_v4  ;;  %511 = vmatpush3.msra.mxu1 %v789_v21 }
  0x26   :  { %512 = vmatprep.mubr.msk.f32.mxu1 %vm628_vm0, %v625_v4  ;;  %550 = vmatprep.subr.mxu1 %v625_v4 }
  0x27   :  { %600 = vset.pattern.permute.xlu0 %v627_v7 }
  0x7d   :  { %v33_v24 = vpop.permute.xlu0 %32  ;;  %v193_v27 = vpop.permute.xlu1 %192 }
  0x7e   :  { %vm34_vm1 = vcmp.eq.s32.totalorder %v804_v23, %v33_v24  ;;  %vm194_vm3 = vcmp.eq.s32.totalorder %v804_v23, %v193_v27 }
  0x7f   :  { %478 = vmatmul.mubr.msk.f32.vlgmr.msra.gmra.mxu0 %vm34_vm1, %v629_v25 }
  0x80   :  { %516 = vmatpush3.msra.mxu0 %v655_v3  ;;  %547 = vmatprep.mubr.msk.f32.mxu0 %vm628_vm0, %v625_v4 }
  0x81   :  { %517 = vmatprep.subr.mxu0 %v625_v4 }
  0x82   :  { %518 = vmatpush3.msra.mxu0 %v665_v5  ;;  %v111_v26 = vpop.permute.xlu0 %110  ;;  %v275_v28 = vpop.permute.xlu1 %274 }
  0x83   :  { %519 = vmatprep.subr.mxu0 %v625_v4  ;;  %vm112_vm2 = vcmp.eq.s32.totalorder %v804_v23, %v111_v26  ;;  %vm276_vm4 = vcmp.eq.s32.totalorder %v804_v23, %v275_v28 }
  0x84   :  { %520 = vmatpush3.msra.mxu0 %v672_v8  ;;  %513 = vmatmul.mubr.msk.f32.vlgmr.msra.gmra.mxu1 %vm112_vm2, %v629_v25 }
  0x85   :  { %521 = vmatprep.subr.mxu0 %v625_v4  ;;  %551 = vmatpush3.msra.mxu1 %v655_v3 }
  0x86   :  { %522 = vmatpush3.msra.mxu0 %v680_v9  ;;  %552 = vmatprep.subr.mxu1 %v625_v4 }
  0x87   :  { %523 = vmatprep.subr.mxu0 %v625_v4  ;;  %553 = vmatpush3.msra.mxu1 %v665_v5 }
  0x88   :  { %524 = vmatpush3.msra.mxu0 %v689_v10  ;;  %554 = vmatprep.subr.mxu1 %v625_v4 }
  0x89   :  { %525 = vmatprep.subr.mxu0 %v625_v4  ;;  %555 = vmatpush3.msra.mxu1 %v672_v8 }
  0x8a   :  { %526 = vmatpush3.msra.mxu0 %v698_v11  ;;  %556 = vmatprep.subr.mxu1 %v625_v4 }
  0x8b   :  { %527 = vmatprep.subr.mxu0 %v625_v4  ;;  %557 = vmatpush3.msra.mxu1 %v680_v9 }
  0x8c   :  { %528 = vmatpush3.msra.mxu0 %v707_v12  ;;  %558 = vmatprep.subr.mxu1 %v625_v4 }
  0x8d   :  { %529 = vmatprep.subr.mxu0 %v625_v4  ;;  %559 = vmatpush3.msra.mxu1 %v689_v10 }
  0x8e   :  { %530 = vmatpush3.msra.mxu0 %v716_v13  ;;  %560 = vmatprep.subr.mxu1 %v625_v4 }
  0x8f   :  { %531 = vmatprep.subr.mxu0 %v625_v4  ;;  %561 = vmatpush3.msra.mxu1 %v698_v11 }
  0x90   :  { %532 = vmatpush3.msra.mxu0 %v725_v14  ;;  %562 = vmatprep.subr.mxu1 %v625_v4 }
  0x91   :  { %533 = vmatprep.subr.mxu0 %v625_v4  ;;  %563 = vmatpush3.msra.mxu1 %v707_v12 }
  0x92   :  { %534 = vmatpush3.msra.mxu0 %v734_v15  ;;  %564 = vmatprep.subr.mxu1 %v625_v4 }
  0x93   :  { %535 = vmatprep.subr.mxu0 %v625_v4  ;;  %565 = vmatpush3.msra.mxu1 %v716_v13 }
  0x94   :  { %536 = vmatpush3.msra.mxu0 %v743_v16  ;;  %566 = vmatprep.subr.mxu1 %v625_v4 }
  0x95   :  { %537 = vmatprep.subr.mxu0 %v625_v4  ;;  %567 = vmatpush3.msra.mxu1 %v725_v14 }
  0x96   :  { %538 = vmatpush3.msra.mxu0 %v752_v17  ;;  %568 = vmatprep.subr.mxu1 %v625_v4 }
  0x97   :  { %539 = vmatprep.subr.mxu0 %v625_v4  ;;  %569 = vmatpush3.msra.mxu1 %v734_v15 }
  0x98   :  { %540 = vmatpush3.msra.mxu0 %v761_v18  ;;  %570 = vmatprep.subr.mxu1 %v625_v4 }
  0x99   :  { %541 = vmatprep.subr.mxu0 %v625_v4  ;;  %571 = vmatpush3.msra.mxu1 %v743_v16 }
  0x9a   :  { %542 = vmatpush3.msra.mxu0 %v770_v19  ;;  %572 = vmatprep.subr.mxu1 %v625_v4 }
  0x9b   :  { %543 = vmatprep.subr.mxu0 %v625_v4  ;;  %573 = vmatpush3.msra.mxu1 %v752_v17 }
  0x9c   :  { %544 = vmatpush3.msra.mxu0 %v779_v20  ;;  %574 = vmatprep.subr.mxu1 %v625_v4 }
  0x9d   :  { %545 = vmatprep.subr.mxu0 %v625_v4  ;;  %575 = vmatpush3.msra.mxu1 %v761_v18 }
  0x9e   :  { %546 = vmatpush3.msra.mxu0 %v789_v21  ;;  %576 = vmatprep.subr.mxu1 %v625_v4 }
  0x9f   :  { %548 = vmatmul.mubr.msk.f32.vlgmr.msra.gmra.mxu0 %vm194_vm3, %v629_v25  ;;  %577 = vmatpush3.msra.mxu1 %v770_v19 }
  0xa0   :  { %578 = vmatprep.subr.mxu1 %v625_v4  ;;  %582 = vmatprep.mubr.msk.f32.mxu1 %vm628_vm0, %v625_v4 }
  0xa1   :  { %579 = vmatpush3.msra.mxu1 %v779_v20 }
  0xa2   :  { %580 = vmatprep.subr.mxu1 %v625_v4 }
  0xa3   :  { %581 = vmatpush3.msra.mxu1 %v789_v21 }
  0xa4   :  { %583 = vmatmul.mubr.msk.f32.vlgmr.msra.gmra.mxu1 %vm276_vm4, %v629_v25 }
 0x13f   :  { %v103_v29 = vpop.f32.mrf.mxu0 }
 0x140   :  { %108 = vst.msk [vmem:[#allocation2] sm:$0xff] %vm107_vm5, %v103_v29 }
 0x141   :  { %v479_v30 = vpop.f32.mrf.mxu0 }
 0x144   :  { %v181_v31 = vpop.f32.mrf.mxu1 }
 0x145   :  { %186 = vrot.lane.b32.xlu1 %v181_v31, %s630_s1 }
 0x146   :  { %v514_v32 = vpop.f32.mrf.mxu1 }
 0x15f   :  { %v263_v33 = vpop.f32.mrf.mxu0 }
 0x160   :  { %268 = vrot.lane.b32.xlu0 %v263_v33, %s631_s13 }
 0x161   :  { %v549_v34 = vpop.f32.mrf.mxu0 }
 0x164   :  { %v345_v35 = vpop.f32.mrf.mxu1 }
 0x165   :  { %350 = vrot.lane.b32.xlu1 %v345_v35, %s632_s14 }
 0x166   :  { %v584_v36 = vpop.f32.mrf.mxu1 }
 0x1b7   :  { %v187_v37 = vpop.permute.xlu1 %186 }
 0x1b8   :  { %190 = vst.msk [vmem:[#allocation2] sm:$0xff] %vm189_vm6, %v187_v37 }
 0x1d2   :  { %v269_v38 = vpop.permute.xlu0 %268 }
 0x1d3   :  { %272 = vst.msk [vmem:[#allocation2] sm:$0xff] %vm271_vm7, %v269_v38 }
 0x1d7   :  { %v351_v39 = vpop.permute.xlu1 %350 }
 0x1d8   :  { %354 = vst.msk [vmem:[#allocation2] sm:$0xff] %vm353_vm8, %v351_v39 }
 0x1d9   :  { %612 = shalt.err (!%p609_p4)
}
 0x1da   :  { %364 = dma.vmem_to_hbm [thread:$0]  %s362_s16, 128, %s885_s2, [#allocation3]  }
 0x1db   :  { %621 = dma.done.wait [#allocation3], 128  }
 0x1dc   :  { %622 = vsyncadd [#allocation3], 4294967168 }
 0x1dd   :  { %368 = vsyncpa [#allocation3], 1 }

// kernel: tpu_custom_call.1
= control target key start
LH: loop header
LB: loop body
LE: loop exit
PB: predicated region body
PF: predicated region fallthrough
CT: control target
= control target key end

     0   :  { %v623_v1 = vmov 0   ;;  %v624_v2 = vmov 2   ;;  %v625_v4 = vmov 0.0   ;;  %v626_v6 = vmov 1   ;;  %s883_s0 = inlined_call_operand.vmem [shape: s32[8,4], index: 0, kind: input, shape index: {}]   ;;  %s884_s1 = inlined_call_operand.vmem [shape: f32[128,32], index: 1, kind: input, shape index: {}]   ;;  %s885_s2 = inlined_call_operand.hbm [shape: f32[8,128], index: 2, kind: output, shape index: {}]  }
   0x1   :  { %v12_v0 = vld [vmem:[%s883_s0] sm:$0xff]  ;;  %596 = vset.pattern.permute.xlu0 %v623_v1  ;;  %598 = vset.pattern.permute.xlu1 %v624_v2  ;;  %v655_v3 = vld [vmem:[%s884_s1 + $0x78] sm:$0xff]  ;;  %v665_v5 = vld [vmem:[%s884_s1 + $0x70] sm:$0xff]  ;;  %v627_v7 = vmov 3  }
   0x2   :  { %32 = vperm.xlu0 %596, %v12_v0   ;;  %192 = vperm.xlu1 %598, %v12_v0  }
   0x3   :  { %445 = vmatprep.subr.mxu0 %v625_v4  ;;  %480 = vmatprep.subr.mxu1 %v625_v4 }
   0x4   :  { %446 = vmatpush3.msra.mxu0 %v655_v3  ;;  %481 = vmatpush3.msra.mxu1 %v655_v3 }
   0x5   :  { %447 = vmatprep.subr.mxu0 %v625_v4  ;;  %482 = vmatprep.subr.mxu1 %v625_v4 }
   0x6   :  { %597 = vset.pattern.permute.xlu0 %v626_v6  ;;  %599 = vset.pattern.permute.xlu1 %v627_v7 }
   0x7   :  { %7 = vsyncpa [#allocation3], 0  ;;  %110 = vperm.xlu0 %597, %v12_v0   ;;  %274 = vperm.xlu1 %599, %v12_v0   ;;  %v672_v8 = vld [vmem:[%s884_s1 + $0x68] sm:$0xff]  ;;  %v680_v9 = vld [vmem:[%s884_s1 + $0x60] sm:$0xff]  ;;  %vm628_vm0 = vmmov 0   ;;  %v29_v22 = vlaneseq  ;;  %v629_v25 = vmov 1.0  }
   0x8   :  { %448 = vmatpush3.msra.mxu0 %v665_v5  ;;  %483 = vmatpush3.msra.mxu1 %v665_v5  ;;  %v689_v10 = vld [vmem:[%s884_s1 + $0x58] sm:$0xff]  ;;  %v698_v11 = vld [vmem:[%s884_s1 + $0x50] sm:$0xff]  ;;  %v707_v12 = vld [vmem:[%s884_s1 + $0x48] sm:$0xff]  ;;  %vm107_vm5 = vcmask 261120   ;;  %s631_s13 = smov 64   ;;  %s632_s14 = smov 96  }
   0x9   :  { %449 = vmatprep.subr.mxu0 %v625_v4  ;;  %484 = vmatprep.subr.mxu1 %v625_v4  ;;  %v716_v13 = vld [vmem:[%s884_s1 + $0x40] sm:$0xff]  ;;  %v725_v14 = vld [vmem:[%s884_s1 + $0x38] sm:$0xff]  ;;  %v734_v15 = vld [vmem:[%s884_s1 + $0x30] sm:$0xff]  ;;  %v804_v23 = vand.u32 127, %v29_v22  ;;  %vm189_vm6 = vcmask 523520   ;;  %vm271_vm7 = vcmask 785920  }
   0xa   :  { %450 = vmatpush3.msra.mxu0 %v672_v8  ;;  %485 = vmatpush3.msra.mxu1 %v672_v8  ;;  %v743_v16 = vld [vmem:[%s884_s1 + $0x28] sm:$0xff]  ;;  %v752_v17 = vld [vmem:[%s884_s1 + $0x20] sm:$0xff]  ;;  %v761_v18 = vld [vmem:[%s884_s1 + $0x18] sm:$0xff]  ;;  %s633_s15 = smov [#allocation2]   ;;  %vm353_vm8 = vcmask 1048320  }
   0xb   :  { %451 = vmatprep.subr.mxu0 %v625_v4  ;;  %486 = vmatprep.subr.mxu1 %v625_v4  ;;  %v770_v19 = vld [vmem:[%s884_s1 + $0x10] sm:$0xff]  ;;  %v779_v20 = vld [vmem:[%s884_s1 + $0x8] sm:$0xff]  ;;  %v789_v21 = vld [vmem:[%s884_s1] sm:$0xff]  ;;  %s630_s1 = smov 32   ;;  %s361_s16 = sshll.u32 %s633_s15, 4  ;;  %s362_s16 = int_to_ptr.vmem [resolvable:$true] %s361_s16 }
   0xc   :  { %452 = vmatpush3.msra.mxu0 %v680_v9  ;;  %487 = vmatpush3.msra.mxu1 %v680_v9  ;;  %s601_s17 = scalar_lea.vmem %s362_s16, 128  ;;  %p606_p1 = scmp.lt.s32.totalorder %s362_s16, %s362_s16 }
   0xd   :  { %453 = vmatprep.subr.mxu0 %v625_v4  ;;  %488 = vmatprep.subr.mxu1 %v625_v4  ;;  %p602_p0 = scmp.ne.s32.totalorder %s362_s16, %s601_s17  ;;  %p607_p2 = scmp.lt.s32.totalorder %s601_s17, %s601_s17 }
   0xe   :  { %454 = vmatpush3.msra.mxu0 %v689_v10  ;;  %489 = vmatpush3.msra.mxu1 %v689_v10 }
   0xf   :  { %455 = vmatprep.subr.mxu0 %v625_v4  ;;  %490 = vmatprep.subr.mxu1 %v625_v4  ;;  %p608_p3 = por %p607_p2, %p606_p1 }
  0x10   :  { %456 = vmatpush3.msra.mxu0 %v698_v11  ;;  %491 = vmatpush3.msra.mxu1 %v698_v11 }
  0x11   :  { %457 = vmatprep.subr.mxu0 %v625_v4  ;;  %492 = vmatprep.subr.mxu1 %v625_v4  ;;  %p609_p4 = pnand %p608_p3, %p602_p0 }
  0x12   :  { %458 = vmatpush3.msra.mxu0 %v707_v12  ;;  %493 = vmatpush3.msra.mxu1 %v707_v12 }
  0x13   :  { %459 = vmatprep.subr.mxu0 %v625_v4  ;;  %494 = vmatprep.subr.mxu1 %v625_v4 }
  0x14   :  { %460 = vmatpush3.msra.mxu0 %v716_v13  ;;  %495 = vmatpush3.msra.mxu1 %v716_v13 }
  0x15   :  { %461 = vmatprep.subr.mxu0 %v625_v4  ;;  %496 = vmatprep.subr.mxu1 %v625_v4 }
  0x16   :  { %462 = vmatpush3.msra.mxu0 %v725_v14  ;;  %497 = vmatpush3.msra.mxu1 %v725_v14 }
  0x17   :  { %463 = vmatprep.subr.mxu0 %v625_v4  ;;  %498 = vmatprep.subr.mxu1 %v625_v4 }
  0x18   :  { %464 = vmatpush3.msra.mxu0 %v734_v15  ;;  %499 = vmatpush3.msra.mxu1 %v734_v15 }
  0x19   :  { %465 = vmatprep.subr.mxu0 %v625_v4  ;;  %500 = vmatprep.subr.mxu1 %v625_v4 }
  0x1a   :  { %466 = vmatpush3.msra.mxu0 %v743_v16  ;;  %501 = vmatpush3.msra.mxu1 %v743_v16 }
  0x1b   :  { %467 = vmatprep.subr.mxu0 %v625_v4  ;;  %502 = vmatprep.subr.mxu1 %v625_v4 }
  0x1c   :  { %468 = vmatpush3.msra.mxu0 %v752_v17  ;;  %503 = vmatpush3.msra.mxu1 %v752_v17 }
  0x1d   :  { %469 = vmatprep.subr.mxu0 %v625_v4  ;;  %504 = vmatprep.subr.mxu1 %v625_v4 }
  0x1e   :  { %470 = vmatpush3.msra.mxu0 %v761_v18  ;;  %505 = vmatpush3.msra.mxu1 %v761_v18 }
  0x1f   :  { %471 = vmatprep.subr.mxu0 %v625_v4  ;;  %506 = vmatprep.subr.mxu1 %v625_v4 }
  0x20   :  { %472 = vmatpush3.msra.mxu0 %v770_v19  ;;  %477 = vmatprep.mubr.msk.f32.mxu0 %vm628_vm0, %v625_v4 }
  0x21   :  { %473 = vmatprep.subr.mxu0 %v625_v4  ;;  %507 = vmatpush3.msra.mxu1 %v770_v19 }
  0x22   :  { %474 = vmatpush3.msra.mxu0 %v779_v20  ;;  %508 = vmatprep.subr.mxu1 %v625_v4 }
  0x23   :  { %475 = vmatprep.subr.mxu0 %v625_v4  ;;  %509 = vmatpush3.msra.mxu1 %v779_v20 }
  0x24   :  { %476 = vmatpush3.msra.mxu0 %v789_v21  ;;  %510 = vmatprep.subr.mxu1 %v625_v4 }
  0x25   :  { %515 = vmatprep.subr.mxu0 %v625_v4  ;;  %511 = vmatpush3.msra.mxu1 %v789_v21 }
  0x26   :  { %512 = vmatprep.mubr.msk.f32.mxu1 %vm628_vm0, %v625_v4  ;;  %550 = vmatprep.subr.mxu1 %v625_v4 }
  0x27   :  { %600 = vset.pattern.permute.xlu0 %v627_v7 }
  0x7d   :  { %v33_v24 = vpop.permute.xlu0 %32  ;;  %v193_v27 = vpop.permute.xlu1 %192 }
  0x7e   :  { %vm34_vm1 = vcmp.eq.s32.totalorder %v804_v23, %v33_v24  ;;  %vm194_vm3 = vcmp.eq.s32.totalorder %v804_v23, %v193_v27 }
  0x7f   :  { %478 = vmatmul.mubr.msk.f32.vlgmr.msra.gmra.mxu0 %vm34_vm1, %v629_v25 }
  0x80   :  { %516 = vmatpush3.msra.mxu0 %v655_v3  ;;  %547 = vmatprep.mubr.msk.f32.mxu0 %vm628_vm0, %v625_v4 }
  0x81   :  { %517 = vmatprep.subr.mxu0 %v625_v4 }
  0x82   :  { %518 = vmatpush3.msra.mxu0 %v665_v5  ;;  %v111_v26 = vpop.permute.xlu0 %110  ;;  %v275_v28 = vpop.permute.xlu1 %274 }
  0x83   :  { %519 = vmatprep.subr.mxu0 %v625_v4  ;;  %vm112_vm2 = vcmp.eq.s32.totalorder %v804_v23, %v111_v26  ;;  %vm276_vm4 = vcmp.eq.s32.totalorder %v804_v23, %v275_v28 }
  0x84   :  { %520 = vmatpush3.msra.mxu0 %v672_v8  ;;  %513 = vmatmul.mubr.msk.f32.vlgmr.msra.gmra.mxu1 %vm112_vm2, %v629_v25 }
  0x85   :  { %521 = vmatprep.subr.mxu0 %v625_v4  ;;  %551 = vmatpush3.msra.mxu1 %v655_v3 }
  0x86   :  { %522 = vmatpush3.msra.mxu0 %v680_v9  ;;  %552 = vmatprep.subr.mxu1 %v625_v4 }
  0x87   :  { %523 = vmatprep.subr.mxu0 %v625_v4  ;;  %553 = vmatpush3.msra.mxu1 %v665_v5 }
  0x88   :  { %524 = vmatpush3.msra.mxu0 %v689_v10  ;;  %554 = vmatprep.subr.mxu1 %v625_v4 }
  0x89   :  { %525 = vmatprep.subr.mxu0 %v625_v4  ;;  %555 = vmatpush3.msra.mxu1 %v672_v8 }
  0x8a   :  { %526 = vmatpush3.msra.mxu0 %v698_v11  ;;  %556 = vmatprep.subr.mxu1 %v625_v4 }
  0x8b   :  { %527 = vmatprep.subr.mxu0 %v625_v4  ;;  %557 = vmatpush3.msra.mxu1 %v680_v9 }
  0x8c   :  { %528 = vmatpush3.msra.mxu0 %v707_v12  ;;  %558 = vmatprep.subr.mxu1 %v625_v4 }
  0x8d   :  { %529 = vmatprep.subr.mxu0 %v625_v4  ;;  %559 = vmatpush3.msra.mxu1 %v689_v10 }
  0x8e   :  { %530 = vmatpush3.msra.mxu0 %v716_v13  ;;  %560 = vmatprep.subr.mxu1 %v625_v4 }
  0x8f   :  { %531 = vmatprep.subr.mxu0 %v625_v4  ;;  %561 = vmatpush3.msra.mxu1 %v698_v11 }
  0x90   :  { %532 = vmatpush3.msra.mxu0 %v725_v14  ;;  %562 = vmatprep.subr.mxu1 %v625_v4 }
  0x91   :  { %533 = vmatprep.subr.mxu0 %v625_v4  ;;  %563 = vmatpush3.msra.mxu1 %v707_v12 }
  0x92   :  { %534 = vmatpush3.msra.mxu0 %v734_v15  ;;  %564 = vmatprep.subr.mxu1 %v625_v4 }
  0x93   :  { %535 = vmatprep.subr.mxu0 %v625_v4  ;;  %565 = vmatpush3.msra.mxu1 %v716_v13 }
  0x94   :  { %536 = vmatpush3.msra.mxu0 %v743_v16  ;;  %566 = vmatprep.subr.mxu1 %v625_v4 }
  0x95   :  { %537 = vmatprep.subr.mxu0 %v625_v4  ;;  %567 = vmatpush3.msra.mxu1 %v725_v14 }
  0x96   :  { %538 = vmatpush3.msra.mxu0 %v752_v17  ;;  %568 = vmatprep.subr.mxu1 %v625_v4 }
  0x97   :  { %539 = vmatprep.subr.mxu0 %v625_v4  ;;  %569 = vmatpush3.msra.mxu1 %v734_v15 }
  0x98   :  { %540 = vmatpush3.msra.mxu0 %v761_v18  ;;  %570 = vmatprep.subr.mxu1 %v625_v4 }
  0x99   :  { %541 = vmatprep.subr.mxu0 %v625_v4  ;;  %571 = vmatpush3.msra.mxu1 %v743_v16 }
  0x9a   :  { %542 = vmatpush3.msra.mxu0 %v770_v19  ;;  %572 = vmatprep.subr.mxu1 %v625_v4 }
  0x9b   :  { %543 = vmatprep.subr.mxu0 %v625_v4  ;;  %573 = vmatpush3.msra.mxu1 %v752_v17 }
  0x9c   :  { %544 = vmatpush3.msra.mxu0 %v779_v20  ;;  %574 = vmatprep.subr.mxu1 %v625_v4 }
  0x9d   :  { %545 = vmatprep.subr.mxu0 %v625_v4  ;;  %575 = vmatpush3.msra.mxu1 %v761_v18 }
  0x9e   :  { %546 = vmatpush3.msra.mxu0 %v789_v21  ;;  %576 = vmatprep.subr.mxu1 %v625_v4 }
  0x9f   :  { %548 = vmatmul.mubr.msk.f32.vlgmr.msra.gmra.mxu0 %vm194_vm3, %v629_v25  ;;  %577 = vmatpush3.msra.mxu1 %v770_v19 }
  0xa0   :  { %578 = vmatprep.subr.mxu1 %v625_v4  ;;  %582 = vmatprep.mubr.msk.f32.mxu1 %vm628_vm0, %v625_v4 }
  0xa1   :  { %579 = vmatpush3.msra.mxu1 %v779_v20 }
  0xa2   :  { %580 = vmatprep.subr.mxu1 %v625_v4 }
  0xa3   :  { %581 = vmatpush3.msra.mxu1 %v789_v21 }
  0xa4   :  { %583 = vmatmul.mubr.msk.f32.vlgmr.msra.gmra.mxu1 %vm276_vm4, %v629_v25 }
 0x13f   :  { %v103_v29 = vpop.f32.mrf.mxu0 }
 0x140   :  { %108 = vst.msk [vmem:[#allocation2] sm:$0xff] %vm107_vm5, %v103_v29 }
 0x141   :  { %v479_v30 = vpop.f32.mrf.mxu0 }
 0x144   :  { %v181_v31 = vpop.f32.mrf.mxu1 }
 0x145   :  { %186 = vrot.lane.b32.xlu1 %v181_v31, %s630_s1 }
 0x146   :  { %v514_v32 = vpop.f32.mrf.mxu1 }
 0x15f   :  { %v263_v33 = vpop.f32.mrf.mxu0 }
 0x160   :  { %268 = vrot.lane.b32.xlu0 %v263_v33, %s631_s13 }
 0x161   :  { %v549_v34 = vpop.f32.mrf.mxu0 }
 0x164   :  { %v345_v35 = vpop.f32.mrf.mxu1 }
 0x165   :  { %350 = vrot.lane.b32.xlu1 %v345_v35, %s632_s14 }
 0x166   :  { %v584_v36 = vpop.f32.mrf.mxu1 }
 0x1b7   :  { %v187_v37 = vpop.permute.xlu1 %186 }
 0x1b8   :  { %190 = vst.msk [vmem:[#allocation2] sm:$0xff] %vm189_vm6, %v187_v37 }
 0x1d2   :  { %v269_v38 = vpop.permute.xlu0 %268 }
 0x1d3   :  { %272 = vst.msk [vmem:[#allocation2] sm:$0xff] %vm271_vm7, %v269_v38 }
 0x1d7   :  { %v351_v39 = vpop.permute.xlu1 %350 }
 0x1d8   :  { %354 = vst.msk [vmem:[#allocation2] sm:$0xff] %vm353_vm8, %v351_v39 }
 0x1d9   :  { %612 = shalt.err (!%p609_p4)
}
 0x1da   :  { %364 = dma.vmem_to_hbm [thread:$0]  %s362_s16, 128, %s885_s2, [#allocation3]  }
 0x1db   :  { %621 = dma.done.wait [#allocation3], 128  }
 0x1dc   :  { %622 = vsyncadd [#allocation3], 4294967168 }
 0x1dd   :  { %368 = vsyncpa [#allocation3], 1 }

</bundles_post_ra>
